<compile_context>
chip_gen: v6e
topology: v6e:2x2x1
jax: 0.10.0
libtpu: 0.0.40
codegen_flags: <defaults>
</compile_context>

<pallas_src>
import jax
import jax.numpy as jnp
from jax.experimental import pallas as pl
from jax.experimental.pallas import tpu as pltpu


def cont_time_lstm_kernel(x_ref, h_ref, c_ref, cbar_ref,
                          wx_ref, wh_ref, b_ref, out_ref):
    H = x_ref.shape[1]

    # Fused pre-activation for all 7 gates: (TB, 7H), f32 accumulation on MXU.
    # Two accumulating dots replace cat((x, h), dim=1) @ W -- keeps both
    # operands lane-aligned, no XLU concat on the critical path.
    z = (jnp.dot(x_ref[...], wx_ref[...], preferred_element_type=jnp.float32)
         + jnp.dot(h_ref[...], wh_ref[...], preferred_element_type=jnp.float32)
         + b_ref[...])

    # Gate order along lanes: [input, forget, output, input_bar, forget_bar,
    #                          pre_c, decay].
    # Sigmoid family computed on one packed (TB, 5H) slab (single EUP pass).
    sig = jax.nn.sigmoid(z[:, 0:5 * H])
    gate_input      = sig[:, 0 * H:1 * H]
    gate_forget     = sig[:, 1 * H:2 * H]
    gate_output     = sig[:, 2 * H:3 * H]
    gate_input_bar  = sig[:, 3 * H:4 * H]
    gate_forget_bar = sig[:, 4 * H:5 * H]
    gate_pre_c      = jnp.tanh(z[:, 5 * H:6 * H])
    gate_decay      = jax.nn.softplus(z[:, 6 * H:7 * H])   # Softplus(beta=1.0)

    cell     = gate_forget * c_ref[...] + gate_input * gate_pre_c
    cell_bar = gate_forget_bar * cbar_ref[...] + gate_input_bar * gate_pre_c

    # Single lane-dense (TB, 4H) store: [cell | cell_bar | decay | outgate].
    out_ref[...] = jnp.concatenate(
        [cell, cell_bar, gate_decay, gate_output], axis=1)


def cont_time_lstm_forward(x_i, hidden_i_minus, cell_i_minus,
                           cell_bar_i_minus_1, w_stack, b_stack,
                           *, batch_tile=128):
    """Returns (cell_i, cell_bar_i, gate_decay, gate_output), each (B, H) f32.

    w_stack: (7, 2H, H)  per-gate weights, already transposed for x @ W.
    b_stack: (7, 1, H)   per-gate biases.
    """
    B, H = x_i.shape

    # Fuse per-gate weights/biases along lanes: gate k -> lanes [k*H, (k+1)*H).
    w_fused = jnp.transpose(w_stack, (1, 0, 2)).reshape(2 * H, 7 * H)
    wx = w_fused[:H, :].astype(jnp.bfloat16)     # acts on x_i
    wh = w_fused[H:, :].astype(jnp.bfloat16)     # acts on hidden_i_minus
    b_fused = jnp.transpose(b_stack, (1, 0, 2)).reshape(1, 7 * H)
    b_fused = b_fused.astype(jnp.float32)

    # bf16 operands for the MXU; state stays f32.
    xb = x_i.astype(jnp.bfloat16)
    hb = hidden_i_minus.astype(jnp.bfloat16)
    c = cell_i_minus.astype(jnp.float32)
    cbar = cell_bar_i_minus_1.astype(jnp.float32)

    # Batch tiling: parallel grid axis (shards across v7x's 2 TensorCores).
    tb = B if B <= batch_tile else batch_tile
    assert B % tb == 0 and (tb % 8 == 0 or tb == B), "batch tile must divide B"
    grid = (B // tb,)

    act_spec = pl.BlockSpec((tb, H), lambda i: (i, 0))
    packed = pl.pallas_call(
        cont_time_lstm_kernel,
        out_shape=jax.ShapeDtypeStruct((B, 4 * H), jnp.float32),
        grid_spec=pltpu.PrefetchScalarGridSpec(
            num_scalar_prefetch=0,
            grid=grid,
            in_specs=[
                act_spec,                                        # x
                act_spec,                                        # h
                act_spec,                                        # c
                act_spec,                                        # c_bar
                pl.BlockSpec((H, 7 * H), lambda i: (0, 0)),      # W_x (resident)
                pl.BlockSpec((H, 7 * H), lambda i: (0, 0)),      # W_h (resident)
                pl.BlockSpec((1, 7 * H), lambda i: (0, 0)),      # bias (resident)
            ],
            out_specs=pl.BlockSpec((tb, 4 * H), lambda i: (i, 0)),
        ),
        compiler_params=pltpu.CompilerParams(
            dimension_semantics=("parallel",)),
    )(xb, hb, c, cbar, wx, wh, b_fused)

    cell_i      = packed[:, 0 * H:1 * H]
    cell_bar_i  = packed[:, 1 * H:2 * H]
    gate_decay  = packed[:, 2 * H:3 * H]
    gate_output = packed[:, 3 * H:4 * H]
    return cell_i, cell_bar_i, gate_decay, gate_output


def reference_forward(x_i, h, c, cbar, w_stack, b_stack):
    """Pure-JAX f32 reference mirroring the PyTorch module."""
    xh = jnp.concatenate([x_i, h], axis=1)
    z = [xh @ w_stack[k] + b_stack[k, 0] for k in range(7)]
    gi, gf, go = jax.nn.sigmoid(z[0]), jax.nn.sigmoid(z[1]), jax.nn.sigmoid(z[2])
    gib, gfb = jax.nn.sigmoid(z[3]), jax.nn.sigmoid(z[4])
    gpc = jnp.tanh(z[5])
    gd = jax.nn.softplus(z[6])
    cell_i = gf * c + gi * gpc
    cell_bar_i = gfb * cbar + gib * gpc
    return cell_i, cell_bar_i, gd, go


if __name__ == "__main__":
    hidden_dim = 32
    batch = 8

    key = jax.random.PRNGKey(0)
    kx, kh, kc, kcb, kw, kb = jax.random.split(key, 6)

    x_i = jax.random.normal(kx, (batch, hidden_dim), dtype=jnp.float32)
    hidden_i_minus = jax.random.normal(kh, (batch, hidden_dim), dtype=jnp.float32)
    cell_i_minus = jax.random.normal(kc, (batch, hidden_dim), dtype=jnp.float32)
    cell_bar_i_minus_1 = jax.random.normal(kcb, (batch, hidden_dim),
                                           dtype=jnp.float32)

    # Deterministic synthetic parameters (nn.Linear-style uniform init,
    # fan_in = 2 * hidden_dim). Stored already transposed as (2H, H) per gate.
    bound = 1.0 / jnp.sqrt(2.0 * hidden_dim)
    w_stack = jax.random.uniform(
        kw, (7, 2 * hidden_dim, hidden_dim), dtype=jnp.float32,
        minval=-bound, maxval=bound)
    b_stack = jax.random.uniform(
        kb, (7, 1, hidden_dim), dtype=jnp.float32, minval=-bound, maxval=bound)

    outs = cont_time_lstm_forward(
        x_i, hidden_i_minus, cell_i_minus, cell_bar_i_minus_1, w_stack, b_stack)
    outs = jax.block_until_ready(outs)

    refs = reference_forward(
        x_i, hidden_i_minus, cell_i_minus, cell_bar_i_minus_1, w_stack, b_stack)
    # Tolerance loosened vs. pure-f32 reference because the MXU operands are
    # bf16 (accumulation is f32); observed error is O(1e-3), bound is 1e-2.
    for o, r in zip(outs, refs):
        assert o.shape == r.shape and o.dtype == jnp.float32
        assert jnp.allclose(o, r, rtol=1e-2, atol=1e-2)

    print("KERNEL_OK")
</pallas_src>

<mosaic_0001>
module attributes {stable_mosaic.version = 11 : i64} {
  func.func @cont_time_lstm_kernel(%arg0: i32, %arg1: memref<8x32xbf16, #tpu.memory_space<vmem>>, %arg2: memref<8x32xbf16, #tpu.memory_space<vmem>>, %arg3: memref<8x32xf32, #tpu.memory_space<vmem>>, %arg4: memref<8x32xf32, #tpu.memory_space<vmem>>, %arg5: memref<32x224xbf16, #tpu.memory_space<vmem>>, %arg6: memref<32x224xbf16, #tpu.memory_space<vmem>>, %arg7: memref<1x224xf32, #tpu.memory_space<vmem>>, %arg8: memref<8x128xf32, #tpu.memory_space<vmem>>) attributes {dimension_semantics = [#tpu.dimension_semantics<parallel>], iteration_bounds = array<i64: 1>, scalar_prefetch = 0 : i64, scratch_operands = 0 : i64, tpu.core_type = #tpu.core_type<tc>, window_params = [{transform_indices = @transform_0, window_bounds = array<i64: 8, 32>}, {transform_indices = @transform_1, window_bounds = array<i64: 8, 32>}, {transform_indices = @transform_2, window_bounds = array<i64: 8, 32>}, {transform_indices = @transform_3, window_bounds = array<i64: 8, 32>}, {pipeline_mode = #tpu.pipeline_mode<synchronous>, transform_indices = @transform_4, window_bounds = array<i64: 32, 224>}, {pipeline_mode = #tpu.pipeline_mode<synchronous>, transform_indices = @transform_5, window_bounds = array<i64: 32, 224>}, {pipeline_mode = #tpu.pipeline_mode<synchronous>, transform_indices = @transform_6, window_bounds = array<i64: 1, 224>}, {transform_indices = @transform_7, window_bounds = array<i64: 8, 128>}]} {
    %c0 = arith.constant 0 : index
    %c0_0 = arith.constant 0 : index
    %0 = vector.load %arg1[%c0, %c0_0] : memref<8x32xbf16, #tpu.memory_space<vmem>>, vector<8x32xbf16>
    %c0_1 = arith.constant 0 : index
    %c0_2 = arith.constant 0 : index
    %1 = vector.load %arg5[%c0_1, %c0_2] : memref<32x224xbf16, #tpu.memory_space<vmem>>, vector<32x224xbf16>
    %cst = arith.constant dense<0.000000e+00> : vector<8x224xf32>
    %2 = tpu.matmul %0, %1, %cst {dimension_numbers = #tpu.dot_dimension_numbers<[1], [0], [0], [1], [0, 0, 1, 1], [], []>} : vector<8x32xbf16>, vector<32x224xbf16>, vector<8x224xf32> -> vector<8x224xf32>
    %c0_3 = arith.constant 0 : index
    %c0_4 = arith.constant 0 : index
    %3 = vector.load %arg2[%c0_3, %c0_4] : memref<8x32xbf16, #tpu.memory_space<vmem>>, vector<8x32xbf16>
    %c0_5 = arith.constant 0 : index
    %c0_6 = arith.constant 0 : index
    %4 = vector.load %arg6[%c0_5, %c0_6] : memref<32x224xbf16, #tpu.memory_space<vmem>>, vector<32x224xbf16>
    %cst_7 = arith.constant dense<0.000000e+00> : vector<8x224xf32>
    %5 = tpu.matmul %3, %4, %cst_7 {dimension_numbers = #tpu.dot_dimension_numbers<[1], [0], [0], [1], [0, 0, 1, 1], [], []>} : vector<8x32xbf16>, vector<32x224xbf16>, vector<8x224xf32> -> vector<8x224xf32>
    %6 = arith.addf %2, %5 : vector<8x224xf32>
    %c0_8 = arith.constant 0 : index
    %c0_9 = arith.constant 0 : index
    %7 = vector.load %arg7[%c0_8, %c0_9] : memref<1x224xf32, #tpu.memory_space<vmem>>, vector<1x224xf32>
    %8 = vector.broadcast %7 : vector<1x224xf32> to vector<8x224xf32>
    %9 = arith.addf %6, %8 : vector<8x224xf32>
    %10 = vector.extract_strided_slice %9 {offsets = [0, 0], sizes = [8, 160], strides = [1, 1]} : vector<8x224xf32> to vector<8x160xf32>
    %11 = arith.negf %10 : vector<8x160xf32>
    %12 = math.exp %11 : vector<8x160xf32>
    %cst_10 = arith.constant 1.000000e+00 : f32
    %13 = vector.broadcast %cst_10 : f32 to vector<8x160xf32>
    %14 = arith.addf %13, %12 : vector<8x160xf32>
    %15 = arith.divf %13, %14 : vector<8x160xf32>
    %16 = vector.extract_strided_slice %15 {offsets = [0, 0], sizes = [8, 32], strides = [1, 1]} : vector<8x160xf32> to vector<8x32xf32>
    %17 = vector.extract_strided_slice %15 {offsets = [0, 32], sizes = [8, 32], strides = [1, 1]} : vector<8x160xf32> to vector<8x32xf32>
    %18 = vector.extract_strided_slice %15 {offsets = [0, 64], sizes = [8, 32], strides = [1, 1]} : vector<8x160xf32> to vector<8x32xf32>
    %19 = vector.extract_strided_slice %15 {offsets = [0, 96], sizes = [8, 32], strides = [1, 1]} : vector<8x160xf32> to vector<8x32xf32>
    %20 = vector.extract_strided_slice %15 {offsets = [0, 128], sizes = [8, 32], strides = [1, 1]} : vector<8x160xf32> to vector<8x32xf32>
    %21 = vector.extract_strided_slice %9 {offsets = [0, 160], sizes = [8, 32], strides = [1, 1]} : vector<8x224xf32> to vector<8x32xf32>
    %22 = math.tanh %21 : vector<8x32xf32>
    %23 = vector.extract_strided_slice %9 {offsets = [0, 192], sizes = [8, 32], strides = [1, 1]} : vector<8x224xf32> to vector<8x32xf32>
    %cst_11 = arith.constant 0.000000e+00 : f32
    %24 = vector.broadcast %cst_11 : f32 to vector<8x32xf32>
    %25 = arith.maximumf %23, %24 : vector<8x32xf32>
    %26 = vector.broadcast %cst_11 : f32 to vector<8x32xf32>
    %27 = arith.subf %23, %26 : vector<8x32xf32>
    %28 = arith.cmpf one, %27, %27 : vector<8x32xf32>
    %29 = vector.broadcast %cst_11 : f32 to vector<8x32xf32>
    %30 = arith.addf %23, %29 : vector<8x32xf32>
    %31 = math.absf %27 : vector<8x32xf32>
    %cst_12 = arith.constant 0.000000e+00 : f32
    %32 = vector.broadcast %cst_12 : f32 to vector<8x32xf32>
    %33 = arith.subf %32, %31 : vector<8x32xf32>
    %34 = math.exp %33 : vector<8x32xf32>
    %35 = math.log1p %34 : vector<8x32xf32>
    %36 = arith.addf %25, %35 : vector<8x32xf32>
    %37 = arith.select %28, %30, %36 : vector<8x32xi1>, vector<8x32xf32>
    %c0_13 = arith.constant 0 : index
    %c0_14 = arith.constant 0 : index
    %38 = vector.load %arg3[%c0_13, %c0_14] : memref<8x32xf32, #tpu.memory_space<vmem>>, vector<8x32xf32>
    %39 = arith.mulf %17, %38 : vector<8x32xf32>
    %40 = arith.mulf %16, %22 : vector<8x32xf32>
    %41 = arith.addf %39, %40 : vector<8x32xf32>
    %c0_15 = arith.constant 0 : index
    %c0_16 = arith.constant 0 : index
    %42 = vector.load %arg4[%c0_15, %c0_16] : memref<8x32xf32, #tpu.memory_space<vmem>>, vector<8x32xf32>
    %43 = arith.mulf %20, %42 : vector<8x32xf32>
    %44 = arith.mulf %19, %22 : vector<8x32xf32>
    %45 = arith.addf %43, %44 : vector<8x32xf32>
    %46 = tpu.concatenate %41, %45, %37, %18 in 1 : vector<8x32xf32>, vector<8x32xf32>, vector<8x32xf32>, vector<8x32xf32> -> vector<8x128xf32>
    %c0_17 = arith.constant 0 : index
    %c0_18 = arith.constant 0 : index
    %47 = vector.load %arg8[%c0_17, %c0_18] : memref<8x128xf32, #tpu.memory_space<vmem>>, vector<8x128xf32>
    tpu.vector_store %arg8[%c0_17, %c0_18], %46 {strides = array<i32>} : memref<8x128xf32, #tpu.memory_space<vmem>>, vector<8x128xf32>,
    return
  }
  func.func @transform_0(%arg0: i32) -> (i32, i32) {
    %c0_i32 = arith.constant 0 : i32
    %c0_i32_0 = arith.constant 0 : i32
    return %arg0, %c0_i32 : i32, i32
  }
  func.func @transform_1(%arg0: i32) -> (i32, i32) {
    %c0_i32 = arith.constant 0 : i32
    %c0_i32_0 = arith.constant 0 : i32
    return %arg0, %c0_i32 : i32, i32
  }
  func.func @transform_2(%arg0: i32) -> (i32, i32) {
    %c0_i32 = arith.constant 0 : i32
    %c0_i32_0 = arith.constant 0 : i32
    return %arg0, %c0_i32 : i32, i32
  }
  func.func @transform_3(%arg0: i32) -> (i32, i32) {
    %c0_i32 = arith.constant 0 : i32
    %c0_i32_0 = arith.constant 0 : i32
    return %arg0, %c0_i32 : i32, i32
  }
  func.func @transform_4(%arg0: i32) -> (i32, i32) {
    %c0_i32 = arith.constant 0 : i32
    %c0_i32_0 = arith.constant 0 : i32
    %c0_i32_1 = arith.constant 0 : i32
    return %c0_i32, %c0_i32_0 : i32, i32
  }
  func.func @transform_5(%arg0: i32) -> (i32, i32) {
    %c0_i32 = arith.constant 0 : i32
    %c0_i32_0 = arith.constant 0 : i32
    %c0_i32_1 = arith.constant 0 : i32
    return %c0_i32, %c0_i32_0 : i32, i32
  }
  func.func @transform_6(%arg0: i32) -> (i32, i32) {
    %c0_i32 = arith.constant 0 : i32
    %c0_i32_0 = arith.constant 0 : i32
    %c0_i32_1 = arith.constant 0 : i32
    return %c0_i32, %c0_i32_0 : i32, i32
  }
  func.func @transform_7(%arg0: i32) -> (i32, i32) {
    %c0_i32 = arith.constant 0 : i32
    %c0_i32_0 = arith.constant 0 : i32
    return %arg0, %c0_i32 : i32, i32
  }
}

</mosaic_0001>

<bundles_post_ra>
// kernel: tpu_custom_call.1
= control target key start
LH: loop header
LB: loop body
LE: loop exit
PB: predicated region body
PF: predicated region fallthrough
CT: control target
= control target key end

     0   :  { %12 = vsyncpa [#allocation3], 0  ;;  %s644_s0 = inlined_call_operand.hbm [shape: bf16[8,32], index: 0, kind: input, shape index: {}]   ;;  %s645_s1 = inlined_call_operand.hbm [shape: bf16[8,32], index: 1, kind: input, shape index: {}]   ;;  %s646_s2 = inlined_call_operand.hbm [shape: f32[8,32], index: 2, kind: input, shape index: {}]   ;;  %s647_s3 = inlined_call_operand.hbm [shape: f32[8,32], index: 3, kind: input, shape index: {}]   ;;  %s648_s4 = inlined_call_operand.hbm [shape: bf16[32,224], index: 4, kind: input, shape index: {}]   ;;  %s649_s5 = inlined_call_operand.hbm [shape: bf16[32,224], index: 5, kind: input, shape index: {}]   ;;  %s650_s6 = inlined_call_operand.vmem [shape: f32[1,224], index: 6, kind: input, shape index: {}]   ;;  %s651_s7 = inlined_call_operand.hbm [shape: f32[8,128], index: 7, kind: output, shape index: {}]  }
   0x1   :  { %13 = vsyncpa [#allocation6], 0 }
   0x2   :  { %14 = vsyncpa [#allocation9], 0 }
   0x3   :  { %15 = vsyncpa [#allocation12], 0 }
   0x4   :  { %16 = vsyncpa [#allocation4], 0  ;;  %s550_s24 = smov [#allocation5]   ;;  %s551_s26 = smov [#allocation8]  }
   0x5   :  { %s33_s25 = sshll.u32 %s550_s24, 4  ;;  %s53_s27 = sshll.u32 %s551_s26, 4  ;;  %s34_s25 = int_to_ptr.vmem [resolvable:$true] %s33_s25  ;;  %s54_s27 = int_to_ptr.vmem [resolvable:$true] %s53_s27 }
   0x6   :  { %s408_s28 = scalar_lea.vmem %s34_s25, 64  ;;  %p413_p1 = scmp.lt.s32.totalorder %s34_s25, %s34_s25 }
   0x7   :  { %p409_p0 = scmp.ne.s32.totalorder %s34_s25, %s408_s28  ;;  %p414_p2 = scmp.lt.s32.totalorder %s408_s28, %s408_s28 }
   0x9   :  { %p415_p3 = por %p414_p2, %p413_p1 }
   0xb   :  { %p416_p4 = pnand %p415_p3, %p409_p0 }
   0xd   :  { %419 = shalt.err (!%p416_p4)
}
   0xe   :  { %36 = dma.hbm_to_vmem [thread:$0]  %s645_s1, 64, %s34_s25, [#allocation6]  }
   0xf   :  { %s428_s8 = scalar_lea.vmem %s54_s27, 128  ;;  %p433_p6 = scmp.lt.s32.totalorder %s54_s27, %s54_s27 }
  0x10   :  { %p429_p5 = scmp.ne.s32.totalorder %s54_s27, %s428_s8  ;;  %p434_p7 = scmp.lt.s32.totalorder %s428_s8, %s428_s8 }
  0x12   :  { %p435_p8 = por %p434_p7, %p433_p6 }
  0x14   :  { %p436_p9 = pnand %p435_p8, %p429_p5 }
  0x16   :  { %439 = shalt.err (!%p436_p9)
}
  0x17   :  { %56 = dma.hbm_to_vmem [thread:$0]  %s647_s3, 128, %s54_s27, [#allocation9]  }
  0x18   :  { %s552_s11 = smov [#allocation2]   ;;  %s553_s13 = smov [#allocation7]  }
  0x19   :  { %s23_s12 = sshll.u32 %s552_s11, 4  ;;  %s43_s14 = sshll.u32 %s553_s13, 4  ;;  %s24_s12 = int_to_ptr.vmem [resolvable:$true] %s23_s12  ;;  %s44_s14 = int_to_ptr.vmem [resolvable:$true] %s43_s14 }
  0x1a   :  { %s448_s15 = scalar_lea.vmem %s24_s12, 64  ;;  %p453_p11 = scmp.lt.s32.totalorder %s24_s12, %s24_s12 }
  0x1b   :  { %p449_p10 = scmp.ne.s32.totalorder %s24_s12, %s448_s15  ;;  %p454_p12 = scmp.lt.s32.totalorder %s448_s15, %s448_s15 }
  0x1d   :  { %p455_p13 = por %p454_p12, %p453_p11 }
  0x1f   :  { %p456_p0 = pnand %p455_p13, %p449_p10 }
  0x21   :  { %459 = shalt.err (!%p456_p0)
}
  0x22   :  { %26 = dma.hbm_to_vmem [thread:$0]  %s644_s0, 64, %s24_s12, [#allocation3]  }
  0x23   :  { %s468_s17 = scalar_lea.vmem %s44_s14, 128  ;;  %p473_p2 = scmp.lt.s32.totalorder %s44_s14, %s44_s14 }
  0x24   :  { %p469_p1 = scmp.ne.s32.totalorder %s44_s14, %s468_s17  ;;  %p474_p3 = scmp.lt.s32.totalorder %s468_s17, %s468_s17 }
  0x26   :  { %p475_p4 = por %p474_p3, %p473_p2 }
  0x28   :  { %p476_p5 = pnand %p475_p4, %p469_p1 }
  0x2a   :  { %479 = shalt.err (!%p476_p5)
}
  0x2b   :  { %46 = dma.hbm_to_vmem [thread:$0]  %s646_s2, 128, %s44_s14, [#allocation6]  }
  0x2c   :  { %s554_s19 = smov [#allocation10]  }
  0x2d   :  { %s62_s20 = sshll.u32 %s554_s19, 4  ;;  %s63_s20 = int_to_ptr.vmem [resolvable:$true] %s62_s20 }
  0x2e   :  { %s488_s21 = scalar_lea.vmem %s63_s20, 512  ;;  %p493_p7 = scmp.lt.s32.totalorder %s63_s20, %s63_s20 }
  0x2f   :  { %p489_p6 = scmp.ne.s32.totalorder %s63_s20, %s488_s21  ;;  %p494_p8 = scmp.lt.s32.totalorder %s488_s21, %s488_s21 }
  0x31   :  { %p495_p9 = por %p494_p8, %p493_p7 }
  0x33   :  { %p496_p10 = pnand %p495_p9, %p489_p6 }
  0x35   :  { %499 = shalt.err (!%p496_p10)
}
  0x36   :  { %s555_s0 = smov 128   ;;  %s556_s22 = smov 8  }
  0x37   :  { %68 = dma.hbm_to_vmem [thread:$0]  %s648_s4, 512, %s63_s20, [#allocation9], %s555_s0, %s555_s0, %s556_s22  }
  0x38   :  { %s557_s25 = smov [#allocation11]  }
  0x39   :  { %s74_s26 = sshll.u32 %s557_s25, 4  ;;  %s75_s26 = int_to_ptr.vmem [resolvable:$true] %s74_s26 }
  0x3a   :  { %s508_s2 = scalar_lea.vmem %s75_s26, 512  ;;  %p513_p12 = scmp.lt.s32.totalorder %s75_s26, %s75_s26 }
  0x3b   :  { %p509_p11 = scmp.ne.s32.totalorder %s75_s26, %s508_s2  ;;  %p514_p13 = scmp.lt.s32.totalorder %s508_s2, %s508_s2 }
  0x3d   :  { %p515_p0 = por %p514_p13, %p513_p12 }
  0x3f   :  { %p516_p1 = pnand %p515_p0, %p509_p11 }
  0x41   :  { %519 = shalt.err (!%p516_p1)
}
  0x42   :  { %80 = dma.hbm_to_vmem [thread:$0]  %s649_s5, 512, %s75_s26, [#allocation12], %s555_s0, %s555_s0, %s556_s22  }
  0x43   :  { %540 = dma.done.wait [#allocation3], 64  }
  0x44   :  { %541 = vsyncadd [#allocation3], 4294967232 }
  0x45   :  { %542 = dma.done.wait [#allocation6], 192  }
  0x46   :  { %543 = vsyncadd [#allocation6], 4294967104 }
  0x47   :  { %544 = dma.done.wait [#allocation9], 640  }
  0x48   :  { %545 = vsyncadd [#allocation9], 4294966656 }
  0x49   :  { %546 = dma.done.wait [#allocation12], 512  }
  0x4a   :  { %547 = vsyncadd [#allocation12], 4294966784  ;;  %v558_v0 = vmov 0   ;;  %v374_v1 = vld [vmem:[#allocation11 + $0x14] ss:$8 sps:$4 sm:$0xff]   ;;  %s559_s4 = smov 32   ;;  %v243_v12 = vlaneseq }
  0x4b   :  { %168 = vmatprep.mubr.bf16.mxu0 %v558_v0  ;;  %232 = vmatprep.mubr.bf16.mxu1 %v558_v0  ;;  %v376_v2 = vld [vmem:[#allocation10 + $0x14] ss:$8 sps:$4 sm:$0xff]   ;;  %v378_v3 = vld [vmem:[#allocation11 + $0x10] ss:$8 sps:$4 sm:$0xff]   ;;  %v380_v5 = vld [vmem:[#allocation11 + $0x4] ss:$8 sps:$4 sm:$0xff]  }
  0x4c   :  { %148 = vmatprep.subr.bf16.mxu0 %v374_v1  ;;  %v379_v4 = vld [vmem:[#allocation10 + $0x10] ss:$8 sps:$4 sm:$0xff]   ;;  %212 = vmatprep.subr.bf16.mxu1 %v376_v2  ;;  %v382_v6 = vld [vmem:[#allocation10 + $0x4] ss:$8 sps:$4 sm:$0xff]   ;;  %v384_v7 = vld [vmem:[#allocation11] ss:$8 sps:$4 sm:$0xff]  }
  0x4d   :  { %149 = vmatpush1.bf16.msra.mxu0 %v378_v3  ;;  %213 = vmatpush1.bf16.msra.mxu1 %v379_v4  ;;  %v385_v8 = vld [vmem:[#allocation10] ss:$8 sps:$4 sm:$0xff]   ;;  %v286_v9 = vld [vmem:[#allocation7] sm:$0xff]  ;;  %v107_v10 = vld [vmem:[#allocation5] sm:$0xf]  ;;  %vm132_vm0 = vcmask 261120  }
  0x4e   :  { %150 = vmatprep.subr.bf16.mxu0 %v380_v5  ;;  %214 = vmatprep.subr.bf16.mxu1 %v382_v6  ;;  %v102_v11 = vld [vmem:[#allocation2] sm:$0xf]  ;;  %v244_v13 = vshrl.u32 %v243_v12, 7  ;;  %s561_s30 = smov 64   ;;  %v302_v47 = vld [vmem:[#allocation8] sm:$0xff]  ;;  %vm326_vm2 = vcmask 523264  }
  0x4f   :  { %288 = vrot.lane.b32.xlu1 %v286_v9, %s559_s4  ;;  %v241_v15 = vld [vmem:[%s650_s6] sm:$0x3]  ;;  %s560_s6 = smov 96   ;;  %s562_s8 = smov [#allocation13]   ;;  %vm328_vm4 = vcmask 785408  }
  0x50   :  { %v245_v14 = vsub.s32 0, %v244_v13  ;;  %v249_v17 = vsub.s32 1, %v244_v13  ;;  %s337_s9 = sshll.u32 %s562_s8, 4  ;;  %s338_s9 = int_to_ptr.vmem [resolvable:$true] %s337_s9 }
  0x51   :  { %151 = vmatpush1.bf16.msra.mxu0 %v384_v7  ;;  %215 = vmatpush1.bf16.msra.mxu1 %v385_v8  ;;  %s520_s10 = scalar_lea.vmem %s338_s9, 128  ;;  %p525_p3 = scmp.lt.s32.totalorder %s338_s9, %s338_s9 }
  0x52   :  { %v246_v16 = vrot.slane %v241_v15, %v245_v14  ;;  %v250_v21 = vrot.slane %v241_v15, %v249_v17  ;;  %p521_p2 = scmp.ne.s32.totalorder %s338_s9, %s520_s10  ;;  %p526_p4 = scmp.lt.s32.totalorder %s520_s10, %s520_s10 }
  0x54   :  { %353 = vmatmul.mubr.msk.bf16.vlgmr.msra.gmra.mxu0 %vm132_vm0, %v107_v10  ;;  %358 = vmatmul.mubr.msk.bf16.vlgmr.msra.gmra.mxu1 %vm132_vm0, %v102_v11  ;;  %p527_p5 = por %p526_p4, %p525_p3 }
  0x56   :  { %p528_p6 = pnand %p527_p5, %p521_p2 }
  0xc1   :  { %v289_v43 = vpop.permute.xlu1 %288 }
 0x114   :  { %v170_v18 = vpop.f32.mrf.mxu0  ;;  %v234_v19 = vpop.f32.mrf.mxu1 }
 0x115   :  { %v235_v20 = vadd.f32 %v234_v19, %v170_v18 }
 0x116   :  { %v172_v22 = vpop.f32.mrf.mxu0  ;;  %v236_v23 = vpop.f32.mrf.mxu1 }
 0x117   :  { %v253_v24 = vadd.f32 %v246_v16, %v235_v20  ;;  %v237_v25 = vadd.f32 %v236_v23, %v172_v22 }
 0x118   :  { %v174_v26 = vpop.f32.mrf.mxu0  ;;  %v238_v27 = vpop.f32.mrf.mxu1 }
 0x119   :  { %v627_v28 = vadd.f32 %v250_v21, %v237_v25  ;;  %v359_v32 = vmul.f32 -1.442695, %v253_v24 }
 0x11a   :  { %v175_v29 = vpop.f32.mrf.mxu0  ;;  %v239_v30 = vpop.f32.mrf.mxu1 }
 0x11b   :  { %386 = vtanh.f32 %v627_v28  ;;  %v360_v40 = vmul.f32 -1.442695, %v627_v28  ;;  %v271_v52 = vand.u32 2147483647, %v627_v28  ;;  %v268_v0 = vmax.f32 %v627_v28, 0.0 }
 0x11c   :  { %388 = vpow2.f32 %v359_v32  ;;  %vm269_vm3 = vcmp.ne.f32.partialorder %v627_v28, %v627_v28 }
 0x11d   :  { %v272_v53 = vsub.f32 0.0, %v271_v52 }
 0x11f   :  { %v273_v54 = vmul.f32 1.442695, %v272_v53 }
 0x128   :  { %v387_v31 = vpop.eup %386 }
 0x129   :  { %293 = vrot.lane.b32.xlu0 %v387_v31, %s560_s6  ;;  %v389_v33 = vpop.eup %388 }
 0x12a   :  { %v261_v34 = vadd.f32 1.0, %v389_v33 }
 0x12c   :  { %390 = vrcp.f32 %v261_v34 }
 0x12d   :  { %304 = vrot.lane.b32.xlu0 %v387_v31, %s561_s30  ;;  %392 = vpow2.f32 %v360_v40 }
 0x139   :  { %v391_v35 = vpop.eup %390 }
 0x13a   :  { %v393_v41 = vpop.eup %392  ;;  %v291_v44 = vmul.f32 %v391_v35, %v289_v43 }
 0x13b   :  { %v262_v42 = vadd.f32 1.0, %v393_v41 }
 0x13d   :  { %394 = vrcp.f32 %v262_v42 }
 0x13e   :  { %396 = vpow2.f32 %v273_v54 }
 0x14a   :  { %v395_v45 = vpop.eup %394 }
 0x14b   :  { %v303_v49 = vmul.f32 %v395_v45, %v302_v47  ;;  %v397_v55 = vpop.eup %396 }
 0x14c   :  { %v275_v56 = vadd.f32 1.0, %v397_v55  ;;  %v278_v57 = vmul.f32 -0.5, %v397_v55  ;;  %v281_v60 = vand.u32 2147483647, %v397_v55 }
 0x14e   :  { %398 = vlog2.f32 %v275_v56  ;;  %v279_v59 = vadd.f32 1.0, %v278_v57  ;;  %vm282_vm1 = vcmp.lt.f32.partialorder %v281_v60, 0.0004427343 }
 0x150   :  { %v280_v62 = vmul.f32 %v397_v55, %v279_v59 }
 0x15b   :  { %v399_v58 = vpop.eup %398 }
 0x15c   :  { %v277_v61 = vmul.f32 0.6931472, %v399_v58 }
 0x15e   :  { %v283_v63 = vsel %vm282_vm1, %v280_v62, %v277_v61 }
 0x15f   :  { %v284_v2 = vadd.f32 %v283_v63, %v268_v0 }
 0x161   :  { %v285_v5 = vsel %vm269_vm3, %v627_v28, %v284_v2 }
 0x19b   :  { %v294_v36 = vpop.permute.xlu0 %293 }
 0x19c   :  { %v296_v37 = vmul.f32 %v391_v35, %v294_v36 }
 0x19e   :  { %298 = vrot.lane.b32.xlu1 %v296_v37, %s559_s4 }
 0x19f   :  { %v305_v38 = vpop.permute.xlu0 %304 }
 0x1a0   :  { %v307_v39 = vmul.f32 %v391_v35, %v305_v38 }
 0x1a2   :  { %309 = vrot.lane.b32.xlu0 %v307_v39, %s559_s4 }
 0x210   :  { %v299_v46 = vpop.permute.xlu1 %298 }
 0x211   :  { %v301_v48 = vadd.f32 %v299_v46, %v291_v44 }
 0x213   :  { %314 = vrot.lane.b32.xlu1 %v301_v48, %s560_s6 }
 0x214   :  { %v310_v50 = vpop.permute.xlu0 %309 }
 0x215   :  { %v312_v51 = vadd.f32 %v310_v50, %v303_v49 }
 0x217   :  { %318 = vrot.lane.b32.xlu0 %v312_v51, %s559_s4  ;;  %322 = vrot.lane.b32.xlu1 %v391_v35, %s559_s4 }
 0x285   :  { %v315_v1 = vpop.permute.xlu1 %314 }
 0x289   :  { %v319_v3 = vpop.permute.xlu0 %318  ;;  %v323_v7 = vpop.permute.xlu1 %322 }
 0x28a   :  { %v325_v4 = vsel %vm132_vm0, %v315_v1, %v319_v3 }
 0x28b   :  { %v327_v6 = vsel %vm326_vm2, %v325_v4, %v285_v5 }
 0x28c   :  { %v329_v8 = vsel %vm328_vm4, %v327_v6, %v323_v7 }
 0x28d   :  { %330 = vst [vmem:[#allocation13] sm:$0xff] %v329_v8 }
 0x28e   :  { %531 = shalt.err (!%p528_p6)
}
 0x28f   :  { %340 = dma.vmem_to_hbm [thread:$0]  %s338_s9, 128, %s651_s7, [#allocation4]  }
 0x290   :  { %548 = dma.done.wait [#allocation4], 128  }
 0x291   :  { %549 = vsyncadd [#allocation4], 4294967168 }
 0x292   :  { %344 = vsyncpa [#allocation3], 1 }
 0x293   :  { %345 = vsyncpa [#allocation6], 1 }
 0x294   :  { %346 = vsyncpa [#allocation9], 1 }
 0x295   :  { %347 = vsyncpa [#allocation12], 1 }
 0x296   :  { %348 = vsyncpa [#allocation4], 1 }

</bundles_post_ra>
